<compile_context>
chip_gen: v6e
topology: v6e:2x2x1
jax: 0.10.0
libtpu: 0.0.40
codegen_flags: <defaults>
</compile_context>

<pallas_src>
import jax
import jax.numpy as jnp
from jax.experimental import pallas as pl
from jax.experimental.pallas import tpu as pltpu


def _attention_kernel(x_ref, w_ref, b_ref, c_ref, expand_ref, pool_ref,
                      alpha_t_ref, a_t_ref):
    # x_ref:       (B_blk, T*H)  T-folded input rows (lane-dense)
    # w_ref:       (T*H, T*H)    block-diagonal Linear(H,H) weight (T copies of w)
    # b_ref:       (1, T*H)      Linear bias tiled T times
    # c_ref:       (T*H, T)      column t holds the context weight cw in rows [t*H,(t+1)*H)
    # expand_ref:  (T, T*H)      expands per-time alpha across its H lanes
    # pool_ref:    (T*H, H)      stack of T identity(H) blocks: sums over time
    # alpha_t_ref: (T, B_blk)    softmax weights, batch on lanes (lane-dense store)
    # a_t_ref:     (H, B_blk)    pooled output, batch on lanes (lane-dense store)
    f32 = jnp.float32
    x = x_ref[...].astype(f32)                                       # (Bb, TH)

    # Fused Linear(H, H) for all T timesteps of the whole batch block:
    # one full-width MXU contraction, lane-dense bias add + tanh.
    u = jnp.tanh(
        jnp.dot(x, w_ref[...], preferred_element_type=f32) + b_ref[...]
    )                                                                # (Bb, TH)

    # Context projection -> per-(batch, time) scores directly as (Bb, T).
    # Context bias omitted: softmax(s + cb) == softmax(s).
    scores = jnp.dot(u, c_ref[...], preferred_element_type=f32)      # (Bb, T)

    # Softmax over time (T lanes per batch row; no trailing-1 tensors).
    m = jnp.max(scores, axis=-1, keepdims=True)                      # (Bb, 1)
    ex = jnp.exp(scores - m)                                         # (Bb, T)
    inv = pl.reciprocal(jnp.sum(ex, axis=-1, keepdims=True), approx=True)
    alpha = ex * inv                                                 # (Bb, T)

    # Lane-dense alpha store: batch on the lane axis.
    alpha_t_ref[...] = alpha.T.astype(alpha_t_ref.dtype)             # (T, Bb)

    # Attention pooling via two MXU matmuls (MXU has plenty of slack):
    #   alpha_exp[b, t*H + h] = alpha[b, t]
    #   a[b, h] = sum_t alpha[b, t] * x[b, t*H + h]
    alpha_exp = jnp.dot(alpha, expand_ref[...],
                        preferred_element_type=f32)                  # (Bb, TH)
    a = jnp.dot(alpha_exp * x, pool_ref[...],
                preferred_element_type=f32)                          # (Bb, H)

    # Lane-dense a store: batch on the lane axis.
    a_t_ref[...] = a.T.astype(a_t_ref.dtype)                         # (H, Bb)


def _pick_block(B, block_b):
    """Batch rows per grid step.

    Small B -> one full block (no alignment constraints). Large B -> a
    128-aligned block (lane-dense output stores) capped so the grid has at
    least 2 steps (v7x has 2 TensorCores sharing the "parallel" axis).
    """
    if B < 256:
        return B
    blk = max(128, (int(block_b) // 128) * 128)
    at_most_half = 128 * pl.cdiv(B, 2 * 128)   # ceil(B/2) rounded up to 128
    return min(blk, at_most_half)


def attention_forward(gru_out, w, b, cw, cb=None, *, block_b=2048):
    """gru_out: (B, T, H); w: (H, H) already (in -> out); b: (H,); cw: (H, 1).

    cb is accepted for API parity but is a mathematical no-op under softmax
    (raw scores are never returned) and is not passed to the kernel.
    Returns (alpha, a) with shapes (B, 1, T) and (B, 1, H).
    """
    B, T, H = gru_out.shape
    TH = T * H
    dtype = gru_out.dtype
    f32 = jnp.float32

    # Free, row-major T-fold of the input (no HBM copy).
    x2 = gru_out.reshape(B, TH)

    # Tiny constant operands (resident in VMEM, DMA'd once).
    w_bd = jnp.kron(jnp.eye(T, dtype=f32), w.astype(f32))                 # (TH, TH)
    b_row = jnp.tile(b.astype(f32).reshape(1, H), (1, T))                 # (1, TH)
    c_ctx = jnp.kron(jnp.eye(T, dtype=f32), cw.astype(f32).reshape(H, 1)) # (TH, T)
    expand = jnp.kron(jnp.eye(T, dtype=f32), jnp.ones((1, H), f32))       # (T, TH)
    pool = jnp.tile(jnp.eye(H, dtype=f32), (T, 1))                        # (TH, H)

    B_blk = _pick_block(B, block_b)
    n_blocks = pl.cdiv(B, B_blk)   # partial tail block: reads padded, writes clipped

    alpha_t, a_t = pl.pallas_call(
        _attention_kernel,
        out_shape=(
            jax.ShapeDtypeStruct((T, B), dtype),
            jax.ShapeDtypeStruct((H, B), dtype),
        ),
        grid_spec=pltpu.PrefetchScalarGridSpec(
            num_scalar_prefetch=0,
            grid=(n_blocks,),
            in_specs=[
                pl.BlockSpec((B_blk, TH), lambda i: (i, 0)),
                pl.BlockSpec((TH, TH), lambda i: (0, 0)),
                pl.BlockSpec((1, TH), lambda i: (0, 0)),
                pl.BlockSpec((TH, T), lambda i: (0, 0)),
                pl.BlockSpec((T, TH), lambda i: (0, 0)),
                pl.BlockSpec((TH, H), lambda i: (0, 0)),
            ],
            out_specs=[
                pl.BlockSpec((T, B_blk), lambda i: (0, i)),
                pl.BlockSpec((H, B_blk), lambda i: (0, i)),
            ],
        ),
        compiler_params=pltpu.CompilerParams(
            dimension_semantics=("parallel",),
            vmem_limit_bytes=48 * 1024 * 1024,   # covers block_b up to ~4096, < v7x 64 MiB
        ),
    )(x2, w_bd, b_row, c_ctx, expand, pool)

    # Pure layout plumbing on tiny outputs.
    alpha = jnp.transpose(alpha_t).reshape(B, 1, T)
    a = jnp.transpose(a_t).reshape(B, 1, H)
    return alpha, a


def attention_reference(gru_out, w, b, cw, cb):
    """Pure-JAX reference matching the PyTorch forward exactly."""
    h = jnp.einsum("bth,hk->btk", gru_out, w) + b            # Linear(H, H)
    u = jnp.tanh(h)
    s = jnp.einsum("bth,hk->btk", u, cw) + cb                # Linear(H, 1)
    alpha = jax.nn.softmax(s, axis=1)                        # softmax over time
    alpha_p = jnp.transpose(alpha, (0, 2, 1))                # (B, 1, T)
    a = jnp.einsum("bqt,bth->bqh", alpha_p, gru_out)         # (B, 1, H)
    return alpha_p, a


if __name__ == "__main__":
    B, T, H = 64, 8, 32  # batch, seq, ENCODER_HIDDEN_DIMENSION

    key = jax.random.PRNGKey(0)
    k_x, k_w, k_b, k_cw, k_cb, k_x2 = jax.random.split(key, 6)

    gru_out = jax.random.normal(k_x, (B, T, H), dtype=jnp.float32)

    # Linear weight stored already transposed to (in, out); context weight (H, 1).
    w = jax.random.normal(k_w, (H, H), dtype=jnp.float32) * 0.1
    b = jax.random.normal(k_b, (H,), dtype=jnp.float32) * 0.1
    cw = jax.random.normal(k_cw, (H, 1), dtype=jnp.float32) * 0.1
    cb = jax.random.normal(k_cb, (1,), dtype=jnp.float32) * 0.1

    # Single-block path (B < 256 -> one grid step).
    alpha, a = attention_forward(gru_out, w, b, cw, cb)
    jax.block_until_ready((alpha, a))
    alpha_ref, a_ref = attention_reference(gru_out, w, b, cw, cb)
    assert alpha.shape == (B, 1, T) and a.shape == (B, 1, H)
    assert jnp.allclose(alpha, alpha_ref, atol=2e-3, rtol=2e-3)
    assert jnp.allclose(a, a_ref, atol=2e-3, rtol=2e-3)

    # Multi-block path with a partial tail block: B=300 -> 2 steps of 256 rows,
    # the last 212-row tail read is padded and its out-of-range writes clipped.
    B2 = 300
    gru2 = jax.random.normal(k_x2, (B2, T, H), dtype=jnp.float32)
    alpha2, a2 = attention_forward(gru2, w, b, cw, cb)
    jax.block_until_ready((alpha2, a2))
    alpha2_ref, a2_ref = attention_reference(gru2, w, b, cw, cb)
    assert alpha2.shape == (B2, 1, T) and a2.shape == (B2, 1, H)
    assert jnp.allclose(alpha2, alpha2_ref, atol=2e-3, rtol=2e-3)
    assert jnp.allclose(a2, a2_ref, atol=2e-3, rtol=2e-3)

    # Tiny-batch path (block collapses to the full non-aligned batch).
    alpha3, a3 = attention_forward(gru_out[:2], w, b, cw, cb)
    jax.block_until_ready((alpha3, a3))
    alpha3_ref, a3_ref = attention_reference(gru_out[:2], w, b, cw, cb)
    assert jnp.allclose(alpha3, alpha3_ref, atol=2e-3, rtol=2e-3)
    assert jnp.allclose(a3, a3_ref, atol=2e-3, rtol=2e-3)

    print("KERNEL_OK")
</pallas_src>

<mosaic_0001>
module attributes {stable_mosaic.version = 11 : i64} {
  func.func @_attention_kernel(%arg0: i32, %arg1: memref<64x256xf32, #tpu.memory_space<vmem>>, %arg2: memref<256x256xf32, #tpu.memory_space<vmem>>, %arg3: memref<1x256xf32, #tpu.memory_space<vmem>>, %arg4: memref<256x8xf32, #tpu.memory_space<vmem>>, %arg5: memref<8x256xf32, #tpu.memory_space<vmem>>, %arg6: memref<256x32xf32, #tpu.memory_space<vmem>>, %arg7: memref<8x64xf32, #tpu.memory_space<vmem>>, %arg8: memref<32x64xf32, #tpu.memory_space<vmem>>) attributes {dimension_semantics = [#tpu.dimension_semantics<parallel>], iteration_bounds = array<i64: 1>, scalar_prefetch = 0 : i64, scratch_operands = 0 : i64, tpu.core_type = #tpu.core_type<tc>, window_params = [{transform_indices = @transform_0, window_bounds = array<i64: 64, 256>}, {pipeline_mode = #tpu.pipeline_mode<synchronous>, transform_indices = @transform_1, window_bounds = array<i64: 256, 256>}, {pipeline_mode = #tpu.pipeline_mode<synchronous>, transform_indices = @transform_2, window_bounds = array<i64: 1, 256>}, {pipeline_mode = #tpu.pipeline_mode<synchronous>, transform_indices = @transform_3, window_bounds = array<i64: 256, 8>}, {pipeline_mode = #tpu.pipeline_mode<synchronous>, transform_indices = @transform_4, window_bounds = array<i64: 8, 256>}, {pipeline_mode = #tpu.pipeline_mode<synchronous>, transform_indices = @transform_5, window_bounds = array<i64: 256, 32>}, {transform_indices = @transform_6, window_bounds = array<i64: 8, 64>}, {transform_indices = @transform_7, window_bounds = array<i64: 32, 64>}]} {
    %c0 = arith.constant 0 : index
    %c0_0 = arith.constant 0 : index
    %0 = vector.load %arg1[%c0, %c0_0] : memref<64x256xf32, #tpu.memory_space<vmem>>, vector<64x256xf32>
    %c0_1 = arith.constant 0 : index
    %c0_2 = arith.constant 0 : index
    %1 = vector.load %arg2[%c0_1, %c0_2] : memref<256x256xf32, #tpu.memory_space<vmem>>, vector<256x256xf32>
    %cst = arith.constant dense<0.000000e+00> : vector<64x256xf32>
    %2 = tpu.matmul %0, %1, %cst {dimension_numbers = #tpu.dot_dimension_numbers<[1], [0], [0], [1], [0, 0, 1, 1], [], []>} : vector<64x256xf32>, vector<256x256xf32>, vector<64x256xf32> -> vector<64x256xf32>
    %c0_3 = arith.constant 0 : index
    %c0_4 = arith.constant 0 : index
    %3 = vector.load %arg3[%c0_3, %c0_4] : memref<1x256xf32, #tpu.memory_space<vmem>>, vector<1x256xf32>
    %4 = vector.broadcast %3 : vector<1x256xf32> to vector<64x256xf32>
    %5 = arith.addf %2, %4 : vector<64x256xf32>
    %6 = math.tanh %5 : vector<64x256xf32>
    %c0_5 = arith.constant 0 : index
    %c0_6 = arith.constant 0 : index
    %7 = vector.load %arg4[%c0_5, %c0_6] : memref<256x8xf32, #tpu.memory_space<vmem>>, vector<256x8xf32>
    %cst_7 = arith.constant dense<0.000000e+00> : vector<64x8xf32>
    %8 = tpu.matmul %6, %7, %cst_7 {dimension_numbers = #tpu.dot_dimension_numbers<[1], [0], [0], [1], [0, 0, 1, 1], [], []>} : vector<64x256xf32>, vector<256x8xf32>, vector<64x8xf32> -> vector<64x8xf32>
    %cst_8 = arith.constant dense<0xFF800000> : vector<64xf32>
    %9 = vector.multi_reduction <maximumf>, %8, %cst_8 [1] : vector<64x8xf32> to vector<64xf32>
    %10 = vector.shape_cast %9 : vector<64xf32> to vector<64x1xf32>
    %11 = vector.broadcast %10 : vector<64x1xf32> to vector<64x8xf32>
    %12 = arith.subf %8, %11 : vector<64x8xf32>
    %13 = math.exp %12 : vector<64x8xf32>
    %cst_9 = arith.constant dense<0.000000e+00> : vector<64xf32>
    %14 = vector.multi_reduction <add>, %13, %cst_9 [1] : vector<64x8xf32> to vector<64xf32>
    %15 = vector.shape_cast %14 : vector<64xf32> to vector<64x1xf32>
    %16 = tpu.reciprocal %15 {approx = true} : vector<64x1xf32> -> vector<64x1xf32>
    %17 = vector.broadcast %16 : vector<64x1xf32> to vector<64x8xf32>
    %18 = arith.mulf %13, %17 : vector<64x8xf32>
    %19 = tpu.transpose %18, [1, 0] : vector<64x8xf32> -> vector<8x64xf32>
    %c0_10 = arith.constant 0 : index
    %c0_11 = arith.constant 0 : index
    %20 = vector.load %arg7[%c0_10, %c0_11] : memref<8x64xf32, #tpu.memory_space<vmem>>, vector<8x64xf32>
    tpu.vector_store %arg7[%c0_10, %c0_11], %19 {strides = array<i32>} : memref<8x64xf32, #tpu.memory_space<vmem>>, vector<8x64xf32>,
    %c0_12 = arith.constant 0 : index
    %c0_13 = arith.constant 0 : index
    %21 = vector.load %arg5[%c0_12, %c0_13] : memref<8x256xf32, #tpu.memory_space<vmem>>, vector<8x256xf32>
    %cst_14 = arith.constant dense<0.000000e+00> : vector<64x256xf32>
    %22 = tpu.matmul %18, %21, %cst_14 {dimension_numbers = #tpu.dot_dimension_numbers<[1], [0], [0], [1], [0, 0, 1, 1], [], []>} : vector<64x8xf32>, vector<8x256xf32>, vector<64x256xf32> -> vector<64x256xf32>
    %23 = arith.mulf %22, %0 : vector<64x256xf32>
    %c0_15 = arith.constant 0 : index
    %c0_16 = arith.constant 0 : index
    %24 = vector.load %arg6[%c0_15, %c0_16] : memref<256x32xf32, #tpu.memory_space<vmem>>, vector<256x32xf32>
    %cst_17 = arith.constant dense<0.000000e+00> : vector<64x32xf32>
    %25 = tpu.matmul %23, %24, %cst_17 {dimension_numbers = #tpu.dot_dimension_numbers<[1], [0], [0], [1], [0, 0, 1, 1], [], []>} : vector<64x256xf32>, vector<256x32xf32>, vector<64x32xf32> -> vector<64x32xf32>
    %26 = tpu.transpose %25, [1, 0] : vector<64x32xf32> -> vector<32x64xf32>
    %c0_18 = arith.constant 0 : index
    %c0_19 = arith.constant 0 : index
    %27 = vector.load %arg8[%c0_18, %c0_19] : memref<32x64xf32, #tpu.memory_space<vmem>>, vector<32x64xf32>
    tpu.vector_store %arg8[%c0_18, %c0_19], %26 {strides = array<i32>} : memref<32x64xf32, #tpu.memory_space<vmem>>, vector<32x64xf32>,
    return
  }
  func.func @transform_0(%arg0: i32) -> (i32, i32) {
    %c0_i32 = arith.constant 0 : i32
    %c0_i32_0 = arith.constant 0 : i32
    return %arg0, %c0_i32 : i32, i32
  }
  func.func @transform_1(%arg0: i32) -> (i32, i32) {
    %c0_i32 = arith.constant 0 : i32
    %c0_i32_0 = arith.constant 0 : i32
    %c0_i32_1 = arith.constant 0 : i32
    return %c0_i32, %c0_i32_0 : i32, i32
  }
  func.func @transform_2(%arg0: i32) -> (i32, i32) {
    %c0_i32 = arith.constant 0 : i32
    %c0_i32_0 = arith.constant 0 : i32
    %c0_i32_1 = arith.constant 0 : i32
    return %c0_i32, %c0_i32_0 : i32, i32
  }
  func.func @transform_3(%arg0: i32) -> (i32, i32) {
    %c0_i32 = arith.constant 0 : i32
    %c0_i32_0 = arith.constant 0 : i32
    %c0_i32_1 = arith.constant 0 : i32
    return %c0_i32, %c0_i32_0 : i32, i32
  }
  func.func @transform_4(%arg0: i32) -> (i32, i32) {
    %c0_i32 = arith.constant 0 : i32
    %c0_i32_0 = arith.constant 0 : i32
    %c0_i32_1 = arith.constant 0 : i32
    return %c0_i32, %c0_i32_0 : i32, i32
  }
  func.func @transform_5(%arg0: i32) -> (i32, i32) {
    %c0_i32 = arith.constant 0 : i32
    %c0_i32_0 = arith.constant 0 : i32
    %c0_i32_1 = arith.constant 0 : i32
    return %c0_i32, %c0_i32_0 : i32, i32
  }
  func.func @transform_6(%arg0: i32) -> (i32, i32) {
    %c0_i32 = arith.constant 0 : i32
    %c0_i32_0 = arith.constant 0 : i32
    return %c0_i32, %arg0 : i32, i32
  }
  func.func @transform_7(%arg0: i32) -> (i32, i32) {
    %c0_i32 = arith.constant 0 : i32
    %c0_i32_0 = arith.constant 0 : i32
    return %c0_i32, %arg0 : i32, i32
  }
}

</mosaic_0001>

<bundles_post_ra>
// kernel: tpu_custom_call.1
= control target key start
LH: loop header
LB: loop body
LE: loop exit
PB: predicated region body
PF: predicated region fallthrough
CT: control target
= control target key end

     0   :  { %13 = vsyncpa [#allocation3], 0  ;;  %s1855_s0 = inlined_call_operand.hbm [shape: f32[64,256], index: 0, kind: input, shape index: {}]   ;;  %s1856_s1 = inlined_call_operand.vmem [shape: f32[256,256], index: 1, kind: input, shape index: {}]   ;;  %s1857_s2 = inlined_call_operand.vmem [shape: f32[1,256], index: 2, kind: input, shape index: {}]   ;;  %s1858_s3 = inlined_call_operand.vmem [shape: f32[256,8], index: 3, kind: input, shape index: {}]   ;;  %s1859_s4 = inlined_call_operand.vmem [shape: f32[8,256], index: 4, kind: input, shape index: {}]   ;;  %s1860_s5 = inlined_call_operand.vmem [shape: f32[256,32], index: 5, kind: input, shape index: {}]   ;;  %s1861_s6 = inlined_call_operand.hbm [shape: f32[8,64], index: 6, kind: output, shape index: {0}]   ;;  %s1862_s7 = inlined_call_operand.hbm [shape: f32[32,64], index: 7, kind: output, shape index: {1}]  }
   0x1   :  { %14 = vsyncpa [#allocation4], 0 }
   0x2   :  { %15 = vsyncpa [#allocation7], 0  ;;  %s1172_s24 = smov [#allocation2]  }
   0x3   :  { %s21_s25 = sshll.u32 %s1172_s24, 4  ;;  %s22_s25 = int_to_ptr.vmem [resolvable:$true] %s21_s25 }
   0x4   :  { %s1114_s26 = scalar_lea.vmem %s22_s25, 2048  ;;  %p1119_p1 = scmp.lt.s32.totalorder %s22_s25, %s22_s25 }
   0x5   :  { %p1115_p0 = scmp.ne.s32.totalorder %s22_s25, %s1114_s26  ;;  %p1120_p2 = scmp.lt.s32.totalorder %s1114_s26, %s1114_s26 }
   0x7   :  { %p1121_p3 = por %p1120_p2, %p1119_p1 }
   0x9   :  { %p1122_p4 = pnand %p1121_p3, %p1115_p0 }
   0xb   :  { %1125 = shalt.err (!%p1122_p4)
}
   0xc   :  { %s1173_s27 = smov 256   ;;  %s1174_s28 = smov 16  }
   0xd   :  { %27 = dma.hbm_to_vmem [thread:$0]  %s1855_s0, 2048, %s22_s25, [#allocation3], %s1173_s27, %s1173_s27, %s1174_s28  }
   0xe   :  { %1166 = dma.done.wait [#allocation3], 2048  }
   0xf   :  { %1167 = vsyncadd [#allocation3], 4294965248  ;;  %v88_v0 = vld [vmem:[%s1856_s1 + $0xf8] sm:$0xff]  ;;  %v87_v1 = vld [vmem:[%s1856_s1 + $0xf0] sm:$0xff]  ;;  %vm399_vm0 = vcmask 64512   ;;  %vm520_vm1 = vcmask 523264  }
  0x10   :  { %v86_v2 = vld [vmem:[%s1856_s1 + $0xe8] sm:$0xff]  ;;  %133 = vmatprep.subr.mxu0 %v88_v0  ;;  %v85_v3 = vld [vmem:[%s1856_s1 + $0xe0] sm:$0xff]  ;;  %v84_v4 = vld [vmem:[%s1856_s1 + $0xd8] sm:$0xff] }
  0x11   :  { %134 = vmatpush1.msra.mxu0 %v87_v1  ;;  %v83_v5 = vld [vmem:[%s1856_s1 + $0xd0] sm:$0xff]  ;;  %v82_v6 = vld [vmem:[%s1856_s1 + $0xc8] sm:$0xff]  ;;  %v81_v7 = vld [vmem:[%s1856_s1 + $0xc0] sm:$0xff] }
  0x12   :  { %135 = vmatprep.subr.mxu0 %v86_v2  ;;  %v80_v8 = vld [vmem:[%s1856_s1 + $0xb8] sm:$0xff]  ;;  %v79_v9 = vld [vmem:[%s1856_s1 + $0xb0] sm:$0xff]  ;;  %v78_v10 = vld [vmem:[%s1856_s1 + $0xa8] sm:$0xff] }
  0x13   :  { %136 = vmatpush1.msra.mxu0 %v85_v3  ;;  %v77_v11 = vld [vmem:[%s1856_s1 + $0xa0] sm:$0xff]  ;;  %v76_v12 = vld [vmem:[%s1856_s1 + $0x98] sm:$0xff]  ;;  %v75_v13 = vld [vmem:[%s1856_s1 + $0x90] sm:$0xff] }
  0x14   :  { %137 = vmatprep.subr.mxu0 %v84_v4  ;;  %v74_v14 = vld [vmem:[%s1856_s1 + $0x88] sm:$0xff]  ;;  %v73_v15 = vld [vmem:[%s1856_s1 + $0x80] sm:$0xff]  ;;  %v72_v16 = vld [vmem:[%s1856_s1 + $0x78] sm:$0xff] }
  0x15   :  { %138 = vmatpush1.msra.mxu0 %v83_v5  ;;  %v71_v17 = vld [vmem:[%s1856_s1 + $0x70] sm:$0xff]  ;;  %v70_v18 = vld [vmem:[%s1856_s1 + $0x68] sm:$0xff]  ;;  %v69_v19 = vld [vmem:[%s1856_s1 + $0x60] sm:$0xff] }
  0x16   :  { %139 = vmatprep.subr.mxu0 %v82_v6  ;;  %v68_v20 = vld [vmem:[%s1856_s1 + $0x58] sm:$0xff]  ;;  %v67_v21 = vld [vmem:[%s1856_s1 + $0x50] sm:$0xff]  ;;  %v66_v22 = vld [vmem:[%s1856_s1 + $0x48] sm:$0xff] }
  0x17   :  { %140 = vmatpush1.msra.mxu0 %v81_v7  ;;  %v65_v23 = vld [vmem:[%s1856_s1 + $0x40] sm:$0xff]  ;;  %v42_v24 = vld [vmem:[#allocation2 + $0x8] sm:$0xff]  ;;  %v64_v25 = vld [vmem:[%s1856_s1 + $0x38] sm:$0xff] }
  0x18   :  { %141 = vmatprep.subr.mxu0 %v80_v8  ;;  %197 = vmatprep.mubr.f32.mxu0 %v42_v24  ;;  %v63_v26 = vld [vmem:[%s1856_s1 + $0x30] sm:$0xff]  ;;  %v62_v27 = vld [vmem:[%s1856_s1 + $0x28] sm:$0xff]  ;;  %v61_v28 = vld [vmem:[%s1856_s1 + $0x20] sm:$0xff] }
  0x19   :  { %142 = vmatpush1.msra.mxu0 %v79_v9  ;;  %v60_v29 = vld [vmem:[%s1856_s1 + $0x18] sm:$0xff]  ;;  %v59_v30 = vld [vmem:[%s1856_s1 + $0x10] sm:$0xff]  ;;  %v58_v35 = vld [vmem:[%s1856_s1 + $0x8] sm:$0xff] }
  0x1a   :  { %143 = vmatprep.subr.mxu0 %v78_v10  ;;  %v293_v31 = vld [vmem:[%s1858_s3 + $0xf8] sm:$0xff]  ;;  %v292_v33 = vld [vmem:[%s1858_s3 + $0xf0] sm:$0xff]  ;;  %v291_v36 = vld [vmem:[%s1858_s3 + $0xe8] sm:$0xff] }
  0x1b   :  { %144 = vmatpush1.msra.mxu0 %v77_v11  ;;  %889 = vmatprep.subr.mxu1 %v293_v31  ;;  %v277_v32 = vld [vmem:[%s1858_s3 + $0x78] sm:$0xff]  ;;  %v276_v34 = vld [vmem:[%s1858_s3 + $0x70] sm:$0xff]  ;;  %v57_v37 = vld [vmem:[%s1856_s1] sm:$0xff] }
  0x1c   :  { %145 = vmatprep.subr.mxu0 %v76_v12  ;;  %890 = vmatpush3.msra.mxu1 %v277_v32  ;;  %v275_v38 = vld [vmem:[%s1858_s3 + $0x68] sm:$0xff]  ;;  %v120_v39 = vld [vmem:[%s1856_s1 + $0x1f8] sm:$0xff]  ;;  %v290_v40 = vld [vmem:[%s1858_s3 + $0xe0] sm:$0xff] }
  0x1d   :  { %146 = vmatpush1.msra.mxu0 %v75_v13  ;;  %891 = vmatprep.subr.mxu1 %v292_v33  ;;  %v119_v41 = vld [vmem:[%s1856_s1 + $0x1f0] sm:$0xff]  ;;  %v274_v42 = vld [vmem:[%s1858_s3 + $0x60] sm:$0xff]  ;;  %v118_v43 = vld [vmem:[%s1856_s1 + $0x1e8] sm:$0xff] }
  0x1e   :  { %147 = vmatprep.subr.mxu0 %v74_v14  ;;  %892 = vmatpush3.msra.mxu1 %v276_v34  ;;  %v289_v44 = vld [vmem:[%s1858_s3 + $0xd8] sm:$0xff]  ;;  %v117_v45 = vld [vmem:[%s1856_s1 + $0x1e0] sm:$0xff]  ;;  %v288_v48 = vld [vmem:[%s1858_s3 + $0xd0] sm:$0xff] }
  0x1f   :  { %148 = vmatpush1.msra.mxu0 %v73_v15  ;;  %893 = vmatprep.subr.mxu1 %v291_v36  ;;  %v273_v46 = vld [vmem:[%s1858_s3 + $0x58] sm:$0xff]  ;;  %v115_v49 = vld [vmem:[%s1856_s1 + $0x1d0] sm:$0xff]  ;;  %v114_v51 = vld [vmem:[%s1856_s1 + $0x1c8] sm:$0xff] }
  0x20   :  { %149 = vmatprep.subr.mxu0 %v72_v16  ;;  %894 = vmatpush3.msra.mxu1 %v275_v38  ;;  %v116_v47 = vld [vmem:[%s1856_s1 + $0x1d8] sm:$0xff]  ;;  %v272_v50 = vld [vmem:[%s1858_s3 + $0x50] sm:$0xff]  ;;  %v113_v52 = vld [vmem:[%s1856_s1 + $0x1c0] sm:$0xff] }
  0x21   :  { %150 = vmatpush1.msra.mxu0 %v71_v17  ;;  %895 = vmatprep.subr.mxu1 %v290_v40  ;;  %v112_v53 = vld [vmem:[%s1856_s1 + $0x1b8] sm:$0xff]  ;;  %v111_v54 = vld [vmem:[%s1856_s1 + $0x1b0] sm:$0xff]  ;;  %v110_v55 = vld [vmem:[%s1856_s1 + $0x1a8] sm:$0xff] }
  0x22   :  { %151 = vmatprep.subr.mxu0 %v70_v18  ;;  %896 = vmatpush3.msra.mxu1 %v274_v42  ;;  %v109_v56 = vld [vmem:[%s1856_s1 + $0x1a0] sm:$0xff]  ;;  %v108_v57 = vld [vmem:[%s1856_s1 + $0x198] sm:$0xff]  ;;  %v107_v58 = vld [vmem:[%s1856_s1 + $0x190] sm:$0xff] }
  0x23   :  { %152 = vmatpush1.msra.mxu0 %v69_v19  ;;  %897 = vmatprep.subr.mxu1 %v289_v44  ;;  %v106_v59 = vld [vmem:[%s1856_s1 + $0x188] sm:$0xff]  ;;  %v105_v60 = vld [vmem:[%s1856_s1 + $0x180] sm:$0xff]  ;;  %v104_v61 = vld [vmem:[%s1856_s1 + $0x178] sm:$0xff] }
  0x24   :  { %153 = vmatprep.subr.mxu0 %v68_v20  ;;  %898 = vmatpush3.msra.mxu1 %v273_v46  ;;  %v103_v62 = vld [vmem:[%s1856_s1 + $0x170] sm:$0xff]  ;;  %v102_v63 = vld [vmem:[%s1856_s1 + $0x168] sm:$0xff]  ;;  %v101_v0 = vld [vmem:[%s1856_s1 + $0x160] sm:$0xff] }
  0x25   :  { %154 = vmatpush1.msra.mxu0 %v67_v21  ;;  %899 = vmatprep.subr.mxu1 %v288_v48  ;;  %v100_v1 = vld [vmem:[%s1856_s1 + $0x158] sm:$0xff]  ;;  %v99_v2 = vld [vmem:[%s1856_s1 + $0x150] sm:$0xff]  ;;  %v98_v3 = vld [vmem:[%s1856_s1 + $0x148] sm:$0xff]  ;;  %v123_v48 = vlaneseq }
  0x26   :  { %155 = vmatprep.subr.mxu0 %v66_v22  ;;  %900 = vmatpush3.msra.mxu1 %v272_v50  ;;  %v97_v4 = vld [vmem:[%s1856_s1 + $0x140] sm:$0xff]  ;;  %v96_v5 = vld [vmem:[%s1856_s1 + $0x138] sm:$0xff]  ;;  %v95_v6 = vld [vmem:[%s1856_s1 + $0x130] sm:$0xff] }
  0x27   :  { %156 = vmatpush1.msra.mxu0 %v65_v23  ;;  %v94_v7 = vld [vmem:[%s1856_s1 + $0x128] sm:$0xff]  ;;  %v93_v8 = vld [vmem:[%s1856_s1 + $0x120] sm:$0xff]  ;;  %v92_v9 = vld [vmem:[%s1856_s1 + $0x118] sm:$0xff] }
  0x28   :  { %157 = vmatprep.subr.mxu0 %v64_v25  ;;  %v91_v10 = vld [vmem:[%s1856_s1 + $0x110] sm:$0xff]  ;;  %v90_v11 = vld [vmem:[%s1856_s1 + $0x108] sm:$0xff]  ;;  %v89_v12 = vld [vmem:[%s1856_s1 + $0x100] sm:$0xff] }
  0x29   :  { %158 = vmatpush1.msra.mxu0 %v63_v26  ;;  %v1451_v13 = vld [vmem:[#allocation2] sm:$0xff]  ;;  %v1453_v14 = vld [vmem:[#allocation2 + $0x18] sm:$0xff]  ;;  %v1457_v15 = vld [vmem:[#allocation2 + $0x10] sm:$0xff] }
  0x2a   :  { %159 = vmatprep.subr.mxu0 %v62_v27  ;;  %v1459_v16 = vld [vmem:[#allocation2 + $0x28] sm:$0xff]  ;;  %v1463_v17 = vld [vmem:[#allocation2 + $0x20] sm:$0xff]  ;;  %v1465_v18 = vld [vmem:[#allocation2 + $0x38] sm:$0xff] }
  0x2b   :  { %160 = vmatpush1.msra.mxu0 %v61_v28  ;;  %v1469_v19 = vld [vmem:[#allocation2 + $0x30] sm:$0xff]  ;;  %v1471_v20 = vld [vmem:[#allocation2 + $0x48] sm:$0xff]  ;;  %v1475_v21 = vld [vmem:[#allocation2 + $0x40] sm:$0xff] }
  0x2c   :  { %161 = vmatprep.subr.mxu0 %v60_v29  ;;  %v1477_v22 = vld [vmem:[#allocation2 + $0x58] sm:$0xff]  ;;  %v1481_v23 = vld [vmem:[#allocation2 + $0x50] sm:$0xff]  ;;  %v1483_v24 = vld [vmem:[#allocation2 + $0x68] sm:$0xff] }
  0x2d   :  { %162 = vmatpush1.msra.mxu0 %v59_v30  ;;  %v1487_v25 = vld [vmem:[#allocation2 + $0x60] sm:$0xff]  ;;  %v1489_v26 = vld [vmem:[#allocation2 + $0x78] sm:$0xff]  ;;  %v1493_v27 = vld [vmem:[#allocation2 + $0x70] sm:$0xff] }
  0x2e   :  { %163 = vmatprep.subr.mxu0 %v58_v35  ;;  %v287_v28 = vld [vmem:[%s1858_s3 + $0xc8] sm:$0xff]  ;;  %v286_v30 = vld [vmem:[%s1858_s3 + $0xc0] sm:$0xff]  ;;  %v285_v32 = vld [vmem:[%s1858_s3 + $0xb8] sm:$0xff] }
  0x2f   :  { %164 = vmatpush1.msra.mxu0 %v57_v37  ;;  %901 = vmatprep.subr.mxu1 %v287_v28  ;;  %v271_v29 = vld [vmem:[%s1858_s3 + $0x48] sm:$0xff]  ;;  %v270_v31 = vld [vmem:[%s1858_s3 + $0x40] sm:$0xff]  ;;  %v269_v33 = vld [vmem:[%s1858_s3 + $0x38] sm:$0xff] }
  0x30   :  { %165 = vmatprep.subr.mxu0 %v120_v39  ;;  %902 = vmatpush3.msra.mxu1 %v271_v29  ;;  %v284_v34 = vld [vmem:[%s1858_s3 + $0xb0] sm:$0xff]  ;;  %v283_v36 = vld [vmem:[%s1858_s3 + $0xa8] sm:$0xff]  ;;  %v282_v38 = vld [vmem:[%s1858_s3 + $0xa0] sm:$0xff] }
  0x31   :  { %166 = vmatpush2.msra.mxu0 %v119_v41  ;;  %903 = vmatprep.subr.mxu1 %v286_v30  ;;  %v268_v35 = vld [vmem:[%s1858_s3 + $0x30] sm:$0xff]  ;;  %v267_v37 = vld [vmem:[%s1858_s3 + $0x28] sm:$0xff]  ;;  %v266_v39 = vld [vmem:[%s1858_s3 + $0x20] sm:$0xff] }
  0x32   :  { %167 = vmatprep.subr.mxu0 %v118_v43  ;;  %904 = vmatpush3.msra.mxu1 %v270_v31  ;;  %v281_v40 = vld [vmem:[%s1858_s3 + $0x98] sm:$0xff]  ;;  %v280_v42 = vld [vmem:[%s1858_s3 + $0x90] sm:$0xff]  ;;  %v279_v44 = vld [vmem:[%s1858_s3 + $0x88] sm:$0xff] }
  0x33   :  { %168 = vmatpush2.msra.mxu0 %v117_v45  ;;  %905 = vmatprep.subr.mxu1 %v285_v32  ;;  %v265_v41 = vld [vmem:[%s1858_s3 + $0x18] sm:$0xff]  ;;  %v264_v43 = vld [vmem:[%s1858_s3 + $0x10] sm:$0xff]  ;;  %v263_v45 = vld [vmem:[%s1858_s3 + $0x8] sm:$0xff] }
  0x34   :  { %169 = vmatprep.subr.mxu0 %v116_v47  ;;  %906 = vmatpush3.msra.mxu1 %v269_v33  ;;  %v278_v46 = vld [vmem:[%s1858_s3 + $0x80] sm:$0xff] }
  0x35   :  { %170 = vmatpush2.msra.mxu0 %v115_v49  ;;  %907 = vmatprep.subr.mxu1 %v284_v34  ;;  %v262_v47 = vld [vmem:[%s1858_s3] sm:$0xff]  ;;  %v124_v49 = vshrl.u32 %v123_v48, 7 }
  0x36   :  { %171 = vmatprep.subr.mxu0 %v114_v51  ;;  %908 = vmatpush3.msra.mxu1 %v268_v35  ;;  %v121_v51 = vld [vmem:[%s1857_s2] sm:$0x3] }
  0x37   :  { %172 = vmatpush2.msra.mxu0 %v113_v52  ;;  %909 = vmatprep.subr.mxu1 %v283_v36  ;;  %v125_v50 = vsub.s32 0, %v124_v49  ;;  %v129_v52 = vsub.s32 1, %v124_v49 }
  0x38   :  { %173 = vmatprep.subr.mxu0 %v112_v53  ;;  %910 = vmatpush3.msra.mxu1 %v267_v37 }
  0x39   :  { %174 = vmatpush2.msra.mxu0 %v111_v54  ;;  %911 = vmatprep.subr.mxu1 %v282_v38  ;;  %v126_v53 = vrot.slane %v121_v51, %v125_v50  ;;  %v130_v54 = vrot.slane %v121_v51, %v129_v52 }
  0x3a   :  { %175 = vmatprep.subr.mxu0 %v110_v55  ;;  %912 = vmatpush3.msra.mxu1 %v266_v39 }
  0x3b   :  { %176 = vmatpush2.msra.mxu0 %v109_v56  ;;  %913 = vmatprep.subr.mxu1 %v281_v40 }
  0x3c   :  { %177 = vmatprep.subr.mxu0 %v108_v57  ;;  %914 = vmatpush3.msra.mxu1 %v265_v41 }
  0x3d   :  { %178 = vmatpush2.msra.mxu0 %v107_v58  ;;  %915 = vmatprep.subr.mxu1 %v280_v42 }
  0x3e   :  { %179 = vmatprep.subr.mxu0 %v106_v59  ;;  %916 = vmatpush3.msra.mxu1 %v264_v43 }
  0x3f   :  { %180 = vmatpush2.msra.mxu0 %v105_v60  ;;  %917 = vmatprep.subr.mxu1 %v279_v44 }
  0x40   :  { %181 = vmatprep.subr.mxu0 %v104_v61  ;;  %918 = vmatpush3.msra.mxu1 %v263_v45 }
  0x41   :  { %182 = vmatpush2.msra.mxu0 %v103_v62  ;;  %919 = vmatprep.subr.mxu1 %v278_v46 }
  0x42   :  { %183 = vmatprep.subr.mxu0 %v102_v63  ;;  %920 = vmatpush3.msra.mxu1 %v262_v47 }
  0x43   :  { %184 = vmatpush2.msra.mxu0 %v101_v0 }
  0x44   :  { %185 = vmatprep.subr.mxu0 %v100_v1 }
  0x45   :  { %186 = vmatpush2.msra.mxu0 %v99_v2 }
  0x46   :  { %187 = vmatprep.subr.mxu0 %v98_v3 }
  0x47   :  { %188 = vmatpush2.msra.mxu0 %v97_v4 }
  0x48   :  { %189 = vmatprep.subr.mxu0 %v96_v5 }
  0x49   :  { %190 = vmatpush2.msra.mxu0 %v95_v6 }
  0x4a   :  { %191 = vmatprep.subr.mxu0 %v94_v7 }
  0x4b   :  { %192 = vmatpush2.msra.mxu0 %v93_v8 }
  0x4c   :  { %193 = vmatprep.subr.mxu0 %v92_v9 }
  0x4d   :  { %194 = vmatpush2.msra.mxu0 %v91_v10 }
  0x4e   :  { %195 = vmatprep.subr.mxu0 %v90_v11 }
  0x4f   :  { %196 = vmatpush2.msra.mxu0 %v89_v12 }
  0x50   :  { %198 = vmatmul.mubr.f32.vlgmr.msra.gmra.mxu0 %v1451_v13 }
  0x51   :  { %203 = vmatprep.mubr.f32.mxu0 %v1453_v14 }
  0x54   :  { %204 = vmatmul.mubr.f32.gmra.mxu0 %v1457_v15 }
  0x55   :  { %209 = vmatprep.mubr.f32.mxu0 %v1459_v16 }
  0x58   :  { %210 = vmatmul.mubr.f32.gmra.mxu0 %v1463_v17 }
  0x59   :  { %215 = vmatprep.mubr.f32.mxu0 %v1465_v18 }
  0x5c   :  { %216 = vmatmul.mubr.f32.gmra.mxu0 %v1469_v19 }
  0x5d   :  { %221 = vmatprep.mubr.f32.mxu0 %v1471_v20 }
  0x60   :  { %222 = vmatmul.mubr.f32.gmra.mxu0 %v1475_v21 }
  0x61   :  { %227 = vmatprep.mubr.f32.mxu0 %v1477_v22 }
  0x64   :  { %228 = vmatmul.mubr.f32.gmra.mxu0 %v1481_v23 }
  0x65   :  { %233 = vmatprep.mubr.f32.mxu0 %v1483_v24 }
  0x68   :  { %234 = vmatmul.mubr.f32.gmra.mxu0 %v1487_v25 }
  0x69   :  { %239 = vmatprep.mubr.f32.mxu0 %v1489_v26 }
  0x6c   :  { %240 = vmatmul.mubr.f32.gmra.mxu0 %v1493_v27 }
 0x110   :  { %v199_v55 = vpop.f32.mrf.mxu0 }
 0x111   :  { %v200_v56 = vadd.f32 %v199_v55, %v126_v53 }
 0x112   :  { %v201_v57 = vpop.f32.mrf.mxu0 }
 0x113   :  { %v202_v58 = vadd.f32 %v201_v57, %v130_v54 }
 0x114   :  { %v205_v59 = vpop.f32.mrf.mxu0 }
 0x115   :  { %1041 = vtanh.f32 %v202_v58  ;;  %v206_v60 = vadd.f32 %v205_v59, %v126_v53 }
 0x116   :  { %1043 = vtanh.f32 %v200_v56  ;;  %v207_v61 = vpop.f32.mrf.mxu0 }
 0x117   :  { %v208_v62 = vadd.f32 %v207_v61, %v130_v54 }
 0x118   :  { %v211_v63 = vpop.f32.mrf.mxu0 }
 0x119   :  { %1045 = vtanh.f32 %v208_v62  ;;  %v212_v0 = vadd.f32 %v211_v63, %v126_v53 }
 0x11a   :  { %1047 = vtanh.f32 %v206_v60  ;;  %v213_v1 = vpop.f32.mrf.mxu0 }
 0x11b   :  { %v214_v2 = vadd.f32 %v213_v1, %v130_v54 }
 0x11c   :  { %v217_v3 = vpop.f32.mrf.mxu0 }
 0x11d   :  { %1049 = vtanh.f32 %v214_v2  ;;  %v218_v4 = vadd.f32 %v217_v3, %v126_v53 }
 0x11e   :  { %1051 = vtanh.f32 %v212_v0  ;;  %v219_v5 = vpop.f32.mrf.mxu0 }
 0x11f   :  { %v220_v6 = vadd.f32 %v219_v5, %v130_v54 }
 0x120   :  { %v223_v7 = vpop.f32.mrf.mxu0 }
 0x121   :  { %1053 = vtanh.f32 %v220_v6  ;;  %v224_v9 = vadd.f32 %v223_v7, %v126_v53 }
 0x122   :  { %v1042_v8 = vpop.eup %1041  ;;  %1055 = vtanh.f32 %v218_v4  ;;  %v225_v10 = vpop.f32.mrf.mxu0 }
 0x123   :  { %v1044_v11 = vpop.eup %1043  ;;  %v226_v12 = vadd.f32 %v225_v10, %v130_v54  ;;  %358 = vmatprep.mubr.f32.mxu1 %v1042_v8 }
 0x124   :  { %v229_v28 = vpop.f32.mrf.mxu0  ;;  %359 = vmatmul.mubr.f32.vlgmr.msra.gmra.mxu1 %v1044_v11 }
 0x125   :  { %1057 = vtanh.f32 %v226_v12  ;;  %v230_v30 = vadd.f32 %v229_v28, %v126_v53 }
 0x126   :  { %v1046_v29 = vpop.eup %1045  ;;  %1059 = vtanh.f32 %v224_v9  ;;  %v231_v31 = vpop.f32.mrf.mxu0 }
 0x127   :  { %v1048_v32 = vpop.eup %1047  ;;  %v232_v33 = vadd.f32 %v231_v31, %v130_v54  ;;  %363 = vmatprep.mubr.f32.mxu1 %v1046_v29 }
 0x128   :  { %v235_v34 = vpop.f32.mrf.mxu0  ;;  %364 = vmatmul.mubr.f32.gmra.mxu1 %v1048_v32 }
 0x129   :  { %1061 = vtanh.f32 %v232_v33  ;;  %v236_v36 = vadd.f32 %v235_v34, %v126_v53 }
 0x12a   :  { %v1050_v35 = vpop.eup %1049  ;;  %1063 = vtanh.f32 %v230_v30  ;;  %v237_v37 = vpop.f32.mrf.mxu0 }
 0x12b   :  { %v1052_v38 = vpop.eup %1051  ;;  %v238_v39 = vadd.f32 %v237_v37, %v130_v54  ;;  %368 = vmatprep.mubr.f32.mxu1 %v1050_v35  ;;  %v523_v37 = vld [vmem:[%s1859_s4 + $0x8] sm:$0xff] }
 0x12c   :  { %v241_v40 = vpop.f32.mrf.mxu0  ;;  %369 = vmatmul.mubr.f32.gmra.mxu1 %v1052_v38  ;;  %v522_v38 = vld [vmem:[%s1859_s4] sm:$0xff]  ;;  %578 = vmatprep.subr.mxu1 %v523_v37 }
 0x12d   :  { %1065 = vtanh.f32 %v238_v39  ;;  %v242_v42 = vadd.f32 %v241_v40, %v126_v53  ;;  %579 = vmatpush1.msra.mxu1 %v522_v38  ;;  %v1640_v37 = vld [vmem:[%s1860_s5 + $0xe0] sm:$0xff] }
 0x12e   :  { %v1054_v41 = vpop.eup %1053  ;;  %1067 = vtanh.f32 %v236_v36  ;;  %v243_v43 = vpop.f32.mrf.mxu0  ;;  %v1646_v38 = vld [vmem:[%s1860_s5 + $0x60] sm:$0xff] }
 0x12f   :  { %v1056_v44 = vpop.eup %1055  ;;  %v244_v45 = vadd.f32 %v243_v43, %v130_v54  ;;  %373 = vmatprep.mubr.f32.mxu1 %v1054_v41 }
 0x130   :  { %374 = vmatmul.mubr.f32.gmra.mxu1 %v1056_v44 }
 0x131   :  { %1069 = vtanh.f32 %v244_v45 }
 0x132   :  { %v1058_v46 = vpop.eup %1057  ;;  %1071 = vtanh.f32 %v242_v42 }
 0x133   :  { %v1060_v47 = vpop.eup %1059  ;;  %378 = vmatprep.mubr.f32.mxu1 %v1058_v46 }
 0x134   :  { %379 = vmatmul.mubr.f32.gmra.mxu1 %v1060_v47 }
 0x136   :  { %v1062_v48 = vpop.eup %1061 }
 0x137   :  { %v1064_v49 = vpop.eup %1063  ;;  %383 = vmatprep.mubr.f32.mxu1 %v1062_v48 }
 0x138   :  { %384 = vmatmul.mubr.f32.gmra.mxu1 %v1064_v49 }
 0x13a   :  { %v1066_v50 = vpop.eup %1065 }
 0x13b   :  { %v1068_v51 = vpop.eup %1067  ;;  %388 = vmatprep.mubr.f32.mxu1 %v1066_v50 }
 0x13c   :  { %389 = vmatmul.mubr.f32.gmra.mxu1 %v1068_v51 }
 0x13e   :  { %v1070_v52 = vpop.eup %1069 }
 0x13f   :  { %v1072_v53 = vpop.eup %1071  ;;  %393 = vmatprep.mubr.f32.mxu1 %v1070_v52 }
 0x140   :  { %394 = vmatmul.mubr.f32.gmra.mxu1 %v1072_v53 }
 0x1e4   :  { %v921_v54 = vpop.f32.mrf.mxu1 }
 0x1e6   :  { %v922_v55 = vpop.f32.mrf.mxu1 }
 0x1e7   :  { %v923_v56 = vadd.f32 %v922_v55, %v921_v54 }
 0x1e8   :  { %v924_v57 = vpop.f32.mrf.mxu1 }
 0x1e9   :  { %v400_v58 = vsel %vm399_vm0, %v923_v56, -inf }
 0x1ea   :  { %v925_v59 = vpop.f32.mrf.mxu1  ;;  %401 = vmax.xlane.f32.xlu0 %v400_v58 }
 0x1eb   :  { %v926_v60 = vadd.f32 %v925_v59, %v924_v57 }
 0x1ec   :  { %v927_v61 = vpop.f32.mrf.mxu1 }
 0x1ed   :  { %v403_v62 = vsel %vm399_vm0, %v926_v60, -inf }
 0x1ee   :  { %v928_v63 = vpop.f32.mrf.mxu1  ;;  %404 = vmax.xlane.f32.xlu0 %v403_v62 }
 0x1ef   :  { %v929_v0 = vadd.f32 %v928_v63, %v927_v61 }
 0x1f0   :  { %v930_v1 = vpop.f32.mrf.mxu1 }
 0x1f1   :  { %v406_v2 = vsel %vm399_vm0, %v929_v0, -inf }
 0x1f2   :  { %v931_v3 = vpop.f32.mrf.mxu1  ;;  %407 = vmax.xlane.f32.xlu1 %v406_v2 }
 0x1f3   :  { %v932_v4 = vadd.f32 %v931_v3, %v930_v1 }
 0x1f4   :  { %v933_v5 = vpop.f32.mrf.mxu1 }
 0x1f5   :  { %v409_v6 = vsel %vm399_vm0, %v932_v4, -inf }
 0x1f6   :  { %v934_v7 = vpop.f32.mrf.mxu1  ;;  %410 = vmax.xlane.f32.xlu1 %v409_v6 }
 0x1f7   :  { %v935_v8 = vadd.f32 %v934_v7, %v933_v5 }
 0x1f8   :  { %v936_v9 = vpop.f32.mrf.mxu1 }
 0x1f9   :  { %v412_v10 = vsel %vm399_vm0, %v935_v8, -inf }
 0x1fa   :  { %v937_v11 = vpop.f32.mrf.mxu1  ;;  %413 = vmax.xlane.f32.xlu0 %v412_v10 }
 0x1fb   :  { %v938_v12 = vadd.f32 %v937_v11, %v936_v9 }
 0x1fc   :  { %v939_v28 = vpop.f32.mrf.mxu1 }
 0x1fd   :  { %v415_v29 = vsel %vm399_vm0, %v938_v12, -inf }
 0x1fe   :  { %v940_v30 = vpop.f32.mrf.mxu1  ;;  %416 = vmax.xlane.f32.xlu1 %v415_v29 }
 0x1ff   :  { %v941_v31 = vadd.f32 %v940_v30, %v939_v28  ;;  %v1175_v28 = vmov 0.0  }
 0x200   :  { %v942_v32 = vpop.f32.mrf.mxu1  ;;  %612 = vmatprep.mubr.f32.mxu1 %v1175_v28 }
 0x201   :  { %v418_v33 = vsel %vm399_vm0, %v941_v31, -inf }
 0x202   :  { %v943_v34 = vpop.f32.mrf.mxu1  ;;  %419 = vmax.xlane.f32.xlu0 %v418_v33  ;;  %v1617_v33 = vld [vmem:[%s1860_s5 + $0xf0] sm:$0xff] }
 0x203   :  { %v944_v35 = vadd.f32 %v943_v34, %v942_v32  ;;  %v1612_v32 = vld [vmem:[%s1860_s5 + $0x78] sm:$0xff]  ;;  %v1622_v34 = vld [vmem:[%s1860_s5 + $0x70] sm:$0xff] }
 0x205   :  { %v421_v36 = vsel %vm399_vm0, %v944_v35, -inf }
 0x206   :  { %422 = vmax.xlane.f32.xlu1 %v421_v36  ;;  %v1634_v36 = vld [vmem:[%s1860_s5 + $0x68] sm:$0xff] }
 0x273   :  { %v402_v39 = vpop.xlane.xlu0 %401 }
 0x274   :  { %v424_v40 = vsub.f32 %v923_v56, %v402_v39  ;;  %v1652_v39 = vld [vmem:[%s1860_s5 + $0xd8] sm:$0xff] }
 0x276   :  { %v432_v41 = vmul.f32 1.442695, %v424_v40  ;;  %v1658_v40 = vld [vmem:[%s1860_s5 + $0x58] sm:$0xff] }
 0x277   :  { %v405_v42 = vpop.xlane.xlu0 %404 }
 0x278   :  { %1073 = vpow2.f32 %v432_v41  ;;  %v425_v43 = vsub.f32 %v926_v60, %v405_v42  ;;  %v1664_v41 = vld [vmem:[%s1860_s5 + $0xd0] sm:$0xff] }
 0x279   :  { %v1670_v42 = vld [vmem:[%s1860_s5 + $0x50] sm:$0xff] }
 0x27a   :  { %v434_v44 = vmul.f32 1.442695, %v425_v43  ;;  %v1676_v43 = vld [vmem:[%s1860_s5 + $0xc8] sm:$0xff] }
 0x27b   :  { %v408_v45 = vpop.xlane.xlu1 %407 }
 0x27c   :  { %1075 = vpow2.f32 %v434_v44  ;;  %v426_v46 = vsub.f32 %v929_v0, %v408_v45  ;;  %v1682_v44 = vld [vmem:[%s1860_s5 + $0x48] sm:$0xff]  ;;  %v1688_v45 = vld [vmem:[%s1860_s5 + $0xc0] sm:$0xff] }
 0x27e   :  { %v436_v47 = vmul.f32 1.442695, %v426_v46  ;;  %v1694_v46 = vld [vmem:[%s1860_s5 + $0x40] sm:$0xff] }
 0x27f   :  { %v411_v48 = vpop.xlane.xlu1 %410 }
 0x280   :  { %1077 = vpow2.f32 %v436_v47  ;;  %v427_v49 = vsub.f32 %v932_v4, %v411_v48  ;;  %v1700_v47 = vld [vmem:[%s1860_s5 + $0xb8] sm:$0xff] }
 0x281   :  { %v1706_v48 = vld [vmem:[%s1860_s5 + $0x38] sm:$0xff] }
 0x282   :  { %v438_v50 = vmul.f32 1.442695, %v427_v49  ;;  %v1712_v49 = vld [vmem:[%s1860_s5 + $0xb0] sm:$0xff] }
 0x283   :  { %v414_v51 = vpop.xlane.xlu0 %413 }
 0x284   :  { %1079 = vpow2.f32 %v438_v50  ;;  %v428_v52 = vsub.f32 %v935_v8, %v414_v51  ;;  %v1718_v50 = vld [vmem:[%s1860_s5 + $0x30] sm:$0xff]  ;;  %v1724_v51 = vld [vmem:[%s1860_s5 + $0xa8] sm:$0xff] }
 0x285   :  { %v1573_v53 = vpop.eup %1073 }
 0x286   :  { %v440_v54 = vmul.f32 1.442695, %v428_v52  ;;  %v448_v55 = vsel %vm399_vm0, %v1573_v53, 0.0  ;;  %v1730_v52 = vld [vmem:[%s1860_s5 + $0x28] sm:$0xff] }
 0x287   :  { %v417_v56 = vpop.xlane.xlu1 %416  ;;  %449 = vadd.xlane.f32.xlu0 %v448_v55  ;;  %v1742_v55 = vld [vmem:[%s1860_s5 + $0x20] sm:$0xff] }
 0x288   :  { %1081 = vpow2.f32 %v440_v54  ;;  %v429_v57 = vsub.f32 %v938_v12, %v417_v56  ;;  %v1736_v54 = vld [vmem:[%s1860_s5 + $0xa0] sm:$0xff]  ;;  %v1748_v56 = vld [vmem:[%s1860_s5 + $0x98] sm:$0xff] }
 0x289   :  { %v1577_v58 = vpop.eup %1075 }
 0x28a   :  { %v442_v59 = vmul.f32 1.442695, %v429_v57  ;;  %v451_v60 = vsel %vm399_vm0, %v1577_v58, 0.0  ;;  %v1754_v57 = vld [vmem:[%s1860_s5 + $0x18] sm:$0xff] }
 0x28b   :  { %452 = vadd.xlane.f32.xlu1 %v451_v60  ;;  %v420_v61 = vpop.xlane.xlu0 %419 }
 0x28c   :  { %1083 = vpow2.f32 %v442_v59  ;;  %v430_v62 = vsub.f32 %v941_v31, %v420_v61  ;;  %v708_v31 = vld [vmem:[%s1860_s5 + $0xf8] sm:$0xff]  ;;  %v1760_v59 = vld [vmem:[%s1860_s5 + $0x90] sm:$0xff] }
 0x28d   :  { %v1581_v63 = vpop.eup %1077  ;;  %945 = vmatprep.subr.mxu0 %v708_v31  ;;  %1001 = vmatprep.subr.mxu1 %v708_v31 }
 0x28e   :  { %v444_v0 = vmul.f32 1.442695, %v430_v62  ;;  %v454_v1 = vsel %vm399_vm0, %v1581_v63, 0.0  ;;  %946 = vmatpush3.msra.mxu0 %v1612_v32 }
 0x28f   :  { %v423_v2 = vpop.xlane.xlu1 %422  ;;  %455 = vadd.xlane.f32.xlu0 %v454_v1  ;;  %947 = vmatprep.subr.mxu0 %v1617_v33 }
 0x290   :  { %1085 = vpow2.f32 %v444_v0  ;;  %v431_v3 = vsub.f32 %v944_v35, %v423_v2  ;;  %v1628_v35 = vld [vmem:[%s1860_s5 + $0xe8] sm:$0xff]  ;;  %948 = vmatpush3.msra.mxu0 %v1622_v34 }
 0x291   :  { %v1585_v4 = vpop.eup %1079  ;;  %949 = vmatprep.subr.mxu0 %v1628_v35 }
 0x292   :  { %v446_v5 = vmul.f32 1.442695, %v431_v3  ;;  %v457_v6 = vsel %vm399_vm0, %v1585_v4, 0.0  ;;  %950 = vmatpush3.msra.mxu0 %v1634_v36 }
 0x293   :  { %458 = vadd.xlane.f32.xlu1 %v457_v6  ;;  %951 = vmatprep.subr.mxu0 %v1640_v37 }
 0x294   :  { %1087 = vpow2.f32 %v446_v5  ;;  %952 = vmatpush3.msra.mxu0 %v1646_v38 }
 0x295   :  { %v1589_v7 = vpop.eup %1081  ;;  %953 = vmatprep.subr.mxu0 %v1652_v39 }
 0x296   :  { %v460_v8 = vsel %vm399_vm0, %v1589_v7, 0.0  ;;  %954 = vmatpush3.msra.mxu0 %v1658_v40 }
 0x297   :  { %461 = vadd.xlane.f32.xlu0 %v460_v8  ;;  %955 = vmatprep.subr.mxu0 %v1664_v41 }
 0x298   :  { %956 = vmatpush3.msra.mxu0 %v1670_v42 }
 0x299   :  { %v1593_v9 = vpop.eup %1083  ;;  %957 = vmatprep.subr.mxu0 %v1676_v43 }
 0x29a   :  { %v463_v10 = vsel %vm399_vm0, %v1593_v9, 0.0  ;;  %958 = vmatpush3.msra.mxu0 %v1682_v44 }
 0x29b   :  { %464 = vadd.xlane.f32.xlu1 %v463_v10  ;;  %959 = vmatprep.subr.mxu0 %v1688_v45 }
 0x29c   :  { %960 = vmatpush3.msra.mxu0 %v1694_v46 }
 0x29d   :  { %v1597_v11 = vpop.eup %1085  ;;  %961 = vmatprep.subr.mxu0 %v1700_v47 }
 0x29e   :  { %v466_v12 = vsel %vm399_vm0, %v1597_v11, 0.0  ;;  %962 = vmatpush3.msra.mxu0 %v1706_v48 }
 0x29f   :  { %467 = vadd.xlane.f32.xlu0 %v466_v12  ;;  %963 = vmatprep.subr.mxu0 %v1712_v49 }
 0x2a0   :  { %964 = vmatpush3.msra.mxu0 %v1718_v50 }
 0x2a1   :  { %v1602_v29 = vpop.eup %1087  ;;  %965 = vmatprep.subr.mxu0 %v1724_v51 }
 0x2a2   :  { %v469_v30 = vsel %vm399_vm0, %v1602_v29, 0.0  ;;  %966 = vmatpush3.msra.mxu0 %v1730_v52 }
 0x2a3   :  { %470 = vadd.xlane.f32.xlu1 %v469_v30  ;;  %967 = vmatprep.subr.mxu0 %v1736_v54 }
 0x2a4   :  { %968 = vmatpush3.msra.mxu0 %v1742_v55 }
 0x2a5   :  { %969 = vmatprep.subr.mxu0 %v1748_v56 }
 0x2a6   :  { %970 = vmatpush3.msra.mxu0 %v1754_v57 }
 0x2a7   :  { %971 = vmatprep.subr.mxu0 %v1760_v59 }
 0x310   :  { %v450_v60 = vpop.xlane.xlu0 %449 }
 0x311   :  { %1089 = vrcp.f32 %v450_v60 }
 0x314   :  { %v453_v61 = vpop.xlane.xlu1 %452 }
 0x315   :  { %1091 = vrcp.f32 %v453_v61 }
 0x318   :  { %v456_v62 = vpop.xlane.xlu0 %455 }
 0x319   :  { %1093 = vrcp.f32 %v456_v62 }
 0x31c   :  { %v459_v0 = vpop.xlane.xlu1 %458 }
 0x31d   :  { %1095 = vrcp.f32 %v459_v0 }
 0x31e   :  { %v1090_v1 = vpop.eup %1089 }
 0x31f   :  { %v480_v2 = vmul.f32 %v1090_v1, %v1573_v53 }
 0x320   :  { %v462_v3 = vpop.xlane.xlu0 %461 }
 0x321   :  { %1097 = vrcp.f32 %v462_v3  ;;  %488 = vxpose.xlu0.b32.start [1/8] (short) (narrow) %v480_v2, 8  ;;  %881 = vmatmul.mubr.msk.f32.vlgmr.msra.gmra.mxu1 %vm399_vm0, %v480_v2 }
 0x322   :  { %v1092_v5 = vpop.eup %1091  ;;  %618 = vmatprep.mubr.f32.mxu1 %v1175_v28  ;;  %1017 = vmatpush3.msra.mxu1 %v1612_v32 }
 0x323   :  { %v481_v6 = vmul.f32 %v1092_v5, %v1577_v58  ;;  %1002 = vmatprep.subr.mxu1 %v1617_v33 }
 0x324   :  { %v465_v8 = vpop.xlane.xlu1 %464  ;;  %1018 = vmatpush3.msra.mxu1 %v1622_v34 }
 0x325   :  { %1099 = vrcp.f32 %v465_v8  ;;  %489 = vxpose.xlu0.b32.cont [2/8] (short) (narrow) %v481_v6, 8  ;;  %882 = vmatmul.mubr.msk.f32.gmra.mxu1 %vm399_vm0, %v481_v6 }
 0x326   :  { %v1094_v53 = vpop.eup %1093  ;;  %624 = vmatprep.mubr.f32.mxu1 %v1175_v28  ;;  %1003 = vmatprep.subr.mxu1 %v1628_v35 }
 0x327   :  { %v482_v10 = vmul.f32 %v1094_v53, %v1581_v63  ;;  %1019 = vmatpush3.msra.mxu1 %v1634_v36  ;;  %v693_v36 = vld [vmem:[%s1860_s5 + $0x80] sm:$0xff] }
 0x328   :  { %v468_v12 = vpop.xlane.xlu0 %467  ;;  %1004 = vmatprep.subr.mxu1 %v1640_v37  ;;  %v677_v37 = vld [vmem:[%s1860_s5] sm:$0xff] }
 0x329   :  { %1101 = vrcp.f32 %v468_v12  ;;  %490 = vxpose.xlu0.b32.cont [3/8] (short) (narrow) %v482_v10, 8  ;;  %883 = vmatmul.mubr.msk.f32.gmra.mxu1 %vm399_vm0, %v482_v10 }
 0x32a   :  { %v1096_v58 = vpop.eup %1095  ;;  %630 = vmatprep.mubr.f32.mxu1 %v1175_v28  ;;  %1020 = vmatpush3.msra.mxu1 %v1646_v38 }
 0x32b   :  { %v483_v30 = vmul.f32 %v1096_v58, %v1585_v4  ;;  %1005 = vmatprep.subr.mxu1 %v1652_v39 }
 0x32c   :  { %v471_v31 = vpop.xlane.xlu1 %470  ;;  %1021 = vmatpush3.msra.mxu1 %v1658_v40  ;;  %v1105_v40 = vld [vmem:[#allocation2 + $0x8] sm:$0xff] }
 0x32d   :  { %1103 = vrcp.f32 %v471_v31  ;;  %491 = vxpose.xlu0.b32.cont [4/8] (short) (narrow) %v483_v30, 8  ;;  %884 = vmatmul.mubr.msk.f32.gmra.mxu1 %vm399_vm0, %v483_v30 }
 0x32e   :  { %v1098_v63 = vpop.eup %1097  ;;  %636 = vmatprep.mubr.f32.mxu1 %v1175_v28  ;;  %1006 = vmatprep.subr.mxu1 %v1664_v41 }
 0x32f   :  { %v484_v32 = vmul.f32 %v1098_v63, %v1589_v7  ;;  %1022 = vmatpush3.msra.mxu1 %v1670_v42 }
 0x330   :  { %1007 = vmatprep.subr.mxu1 %v1676_v43 }
 0x331   :  { %492 = vxpose.xlu0.b32.cont [5/8] (short) (narrow) %v484_v32, 8  ;;  %885 = vmatmul.mubr.msk.f32.gmra.mxu1 %vm399_vm0, %v484_v32 }
 0x332   :  { %v1100_v4 = vpop.eup %1099  ;;  %642 = vmatprep.mubr.f32.mxu1 %v1175_v28  ;;  %1023 = vmatpush3.msra.mxu1 %v1682_v44 }
 0x333   :  { %v485_v33 = vmul.f32 %v1100_v4, %v1593_v9  ;;  %1008 = vmatprep.subr.mxu1 %v1688_v45 }
 0x334   :  { %1024 = vmatpush3.msra.mxu1 %v1694_v46 }
 0x335   :  { %493 = vxpose.xlu0.b32.cont [6/8] (short) (narrow) %v485_v33, 8  ;;  %886 = vmatmul.mubr.msk.f32.gmra.mxu1 %vm399_vm0, %v485_v33 }
 0x336   :  { %v1102_v7 = vpop.eup %1101  ;;  %648 = vmatprep.mubr.f32.mxu1 %v1175_v28  ;;  %1009 = vmatprep.subr.mxu1 %v1700_v47 }
 0x337   :  { %v486_v34 = vmul.f32 %v1102_v7, %v1597_v11  ;;  %1025 = vmatpush3.msra.mxu1 %v1706_v48  ;;  %v679_v11 = vld [vmem:[%s1860_s5 + $0x10] sm:$0xff] }
 0x338   :  { %1010 = vmatprep.subr.mxu1 %v1712_v49  ;;  %972 = vmatpush3.msra.mxu0 %v679_v11 }
 0x339   :  { %494 = vxpose.xlu0.b32.cont [7/8] (short) (narrow) %v486_v34, 8  ;;  %887 = vmatmul.mubr.msk.f32.gmra.mxu1 %vm399_vm0, %v486_v34 }
 0x33a   :  { %v1104_v9 = vpop.eup %1103  ;;  %654 = vmatprep.mubr.f32.mxu1 %v1175_v28  ;;  %1026 = vmatpush3.msra.mxu1 %v1718_v50  ;;  %v694_v28 = vld [vmem:[%s1860_s5 + $0x88] sm:$0xff] }
 0x33b   :  { %v487_v35 = vmul.f32 %v1104_v9, %v1602_v29  ;;  %1011 = vmatprep.subr.mxu1 %v1724_v51  ;;  %973 = vmatprep.subr.mxu0 %v694_v28  ;;  %v678_v29 = vld [vmem:[%s1860_s5 + $0x8] sm:$0xff]  ;;  %s1176_s5 = smov [#allocation5]  }
 0x33c   :  { %1027 = vmatpush3.msra.mxu1 %v1730_v52  ;;  %974 = vmatpush3.msra.mxu0 %v678_v29  ;;  %s856_s0 = sshll.u32 %s1176_s5, 4  ;;  %s857_s0 = int_to_ptr.vmem [resolvable:$true] %s856_s0 }
 0x33d   :  { %495 = vxpose.xlu0.b32.end [8/8] (short) (narrow) %v487_v35, 8  ;;  %888 = vmatmul.mubr.msk.f32.gmra.mxu1 %vm399_vm0, %v487_v35  ;;  %s1126_s16 = scalar_lea.vmem %s857_s0, 128  ;;  %p1131_p6 = scmp.lt.s32.totalorder %s857_s0, %s857_s0 }
 0x33e   :  { %1012 = vmatprep.subr.mxu1 %v1736_v54  ;;  %975 = vmatprep.subr.mxu0 %v693_v36  ;;  %p1127_p5 = scmp.ne.s32.totalorder %s857_s0, %s1126_s16  ;;  %p1132_p7 = scmp.lt.s32.totalorder %s1126_s16, %s1126_s16 }
 0x33f   :  { %1028 = vmatpush3.msra.mxu1 %v1742_v55  ;;  %976 = vmatpush3.msra.mxu0 %v677_v37 }
 0x340   :  { %1013 = vmatprep.subr.mxu1 %v1748_v56  ;;  %p1133_p8 = por %p1132_p7, %p1131_p6 }
 0x341   :  { %1029 = vmatpush3.msra.mxu1 %v1754_v57 }
 0x342   :  { %1014 = vmatprep.subr.mxu1 %v1760_v59  ;;  %p1134_p9 = pnand %p1133_p8, %p1127_p5 }
 0x343   :  { %1030 = vmatpush3.msra.mxu1 %v679_v11 }
 0x344   :  { %1015 = vmatprep.subr.mxu1 %v694_v28 }
 0x345   :  { %1031 = vmatpush3.msra.mxu1 %v678_v29 }
 0x346   :  { %1016 = vmatprep.subr.mxu1 %v693_v36 }
 0x347   :  { %1032 = vmatpush3.msra.mxu1 %v677_v37 }
 0x39d   :  { %v504_v6 = vpop.trf.xlu0 }
 0x39e   :  { %521 = vst.msk [vmem:[#allocation5] sm:$0xff] %vm520_vm1, %v504_v6 }
 0x3e1   :  { %v614_v38 = vpop.f32.mrf.mxu1 }
 0x3e2   :  { %v661_v42 = vmul.f32 %v614_v38, %v1451_v13 }
 0x3e3   :  { %v616_v39 = vpop.f32.mrf.mxu1 }
 0x3e4   :  { %v662_v41 = vmul.f32 %v1105_v40, %v616_v39 }
 0x3e5   :  { %v620_v43 = vpop.f32.mrf.mxu1 }
 0x3e6   :  { %773 = vmatprep.mubr.f32.mxu0 %v662_v41  ;;  %v663_v46 = vmul.f32 %v620_v43, %v1457_v15 }
 0x3e7   :  { %v622_v44 = vpop.f32.mrf.mxu1  ;;  %774 = vmatmul.mubr.f32.vlgmr.msra.gmra.mxu0 %v661_v42 }
 0x3e8   :  { %v664_v45 = vmul.f32 %v622_v44, %v1453_v14 }
 0x3e9   :  { %v626_v47 = vpop.f32.mrf.mxu1 }
 0x3ea   :  { %778 = vmatprep.mubr.f32.mxu0 %v664_v45  ;;  %v665_v50 = vmul.f32 %v626_v47, %v1463_v17 }
 0x3eb   :  { %v628_v48 = vpop.f32.mrf.mxu1  ;;  %779 = vmatmul.mubr.f32.gmra.mxu0 %v663_v46 }
 0x3ec   :  { %v666_v49 = vmul.f32 %v628_v48, %v1459_v16 }
 0x3ed   :  { %v632_v51 = vpop.f32.mrf.mxu1 }
 0x3ee   :  { %783 = vmatprep.mubr.f32.mxu0 %v666_v49  ;;  %v667_v54 = vmul.f32 %v632_v51, %v1469_v19 }
 0x3ef   :  { %v634_v52 = vpop.f32.mrf.mxu1  ;;  %784 = vmatmul.mubr.f32.gmra.mxu0 %v665_v50 }
 0x3f0   :  { %v668_v13 = vmul.f32 %v634_v52, %v1465_v18 }
 0x3f1   :  { %v638_v55 = vpop.f32.mrf.mxu1 }
 0x3f2   :  { %788 = vmatprep.mubr.f32.mxu0 %v668_v13  ;;  %v669_v56 = vmul.f32 %v638_v55, %v1475_v21 }
 0x3f3   :  { %v640_v14 = vpop.f32.mrf.mxu1  ;;  %789 = vmatmul.mubr.f32.gmra.mxu0 %v667_v54 }
 0x3f4   :  { %v670_v15 = vmul.f32 %v640_v14, %v1471_v20 }
 0x3f5   :  { %v644_v57 = vpop.f32.mrf.mxu1 }
 0x3f6   :  { %793 = vmatprep.mubr.f32.mxu1 %v670_v15  ;;  %v671_v59 = vmul.f32 %v644_v57, %v1481_v23 }
 0x3f7   :  { %v646_v16 = vpop.f32.mrf.mxu1  ;;  %794 = vmatmul.mubr.f32.vlgmr.msra.gmra.mxu1 %v669_v56 }
 0x3f8   :  { %v672_v17 = vmul.f32 %v646_v16, %v1477_v22 }
 0x3f9   :  { %v650_v60 = vpop.f32.mrf.mxu1 }
 0x3fa   :  { %798 = vmatprep.mubr.f32.mxu1 %v672_v17  ;;  %v673_v61 = vmul.f32 %v650_v60, %v1487_v25 }
 0x3fb   :  { %v652_v18 = vpop.f32.mrf.mxu1  ;;  %799 = vmatmul.mubr.f32.gmra.mxu1 %v671_v59 }
 0x3fc   :  { %v674_v19 = vmul.f32 %v652_v18, %v1483_v24 }
 0x3fd   :  { %v656_v62 = vpop.f32.mrf.mxu1 }
 0x3fe   :  { %803 = vmatprep.mubr.f32.mxu1 %v674_v19  ;;  %v675_v0 = vmul.f32 %v656_v62, %v1493_v27 }
 0x3ff   :  { %v658_v20 = vpop.f32.mrf.mxu1  ;;  %804 = vmatmul.mubr.f32.gmra.mxu1 %v673_v61 }
 0x400   :  { %v676_v21 = vmul.f32 %v658_v20, %v1489_v26 }
 0x402   :  { %808 = vmatprep.mubr.f32.mxu1 %v676_v21 }
 0x403   :  { %809 = vmatmul.mubr.f32.gmra.mxu1 %v675_v0 }
 0x4a7   :  { %v977_v22 = vpop.f32.mrf.mxu0 }
 0x4a9   :  { %v978_v23 = vpop.f32.mrf.mxu0 }
 0x4aa   :  { %v979_v1 = vadd.f32 %v978_v23, %v977_v22 }
 0x4ab   :  { %v980_v2 = vpop.f32.mrf.mxu0 }
 0x4ac   :  { %814 = vxpose.xlu1.b32.start [1/8] (short) (narrow) %v979_v1, 32 }
 0x4ad   :  { %v981_v3 = vpop.f32.mrf.mxu0 }
 0x4ae   :  { %v982_v5 = vadd.f32 %v981_v3, %v980_v2 }
 0x4af   :  { %v983_v24 = vpop.f32.mrf.mxu0 }
 0x4b0   :  { %815 = vxpose.xlu1.b32.cont [2/8] (short) (narrow) %v982_v5, 32 }
 0x4b1   :  { %v984_v25 = vpop.f32.mrf.mxu0 }
 0x4b2   :  { %v985_v8 = vadd.f32 %v984_v25, %v983_v24 }
 0x4b3   :  { %v986_v26 = vpop.f32.mrf.mxu0 }
 0x4b4   :  { %816 = vxpose.xlu1.b32.cont [3/8] (short) (narrow) %v985_v8, 32 }
 0x4b5   :  { %v987_v27 = vpop.f32.mrf.mxu0 }
 0x4b6   :  { %v988_v53 = vadd.f32 %v987_v27, %v986_v26 }
 0x4b7   :  { %1137 = shalt.err (!%p1134_p9)
}
 0x4b8   :  { %859 = dma.vmem_to_hbm [thread:$0]  %s857_s0, 128, %s1861_s6, [#allocation4]   ;;  %v989_v10 = vpop.f32.mrf.mxu1  ;;  %817 = vxpose.xlu1.b32.cont [4/8] (short) (narrow) %v988_v53, 32 }
 0x4b9   :  { %s1177_s6 = smov [#allocation6]  }
 0x4ba   :  { %v990_v12 = vpop.f32.mrf.mxu1  ;;  %s865_s19 = sshll.u32 %s1177_s6, 4  ;;  %s866_s19 = int_to_ptr.vmem [resolvable:$true] %s865_s19 }
 0x4bb   :  { %v991_v58 = vadd.f32 %v990_v12, %v989_v10  ;;  %s1146_s20 = scalar_lea.vmem %s866_s19, 512  ;;  %p1151_p11 = scmp.lt.s32.totalorder %s866_s19, %s866_s19 }
 0x4bc   :  { %v992_v30 = vpop.f32.mrf.mxu1  ;;  %p1147_p10 = scmp.ne.s32.totalorder %s866_s19, %s1146_s20  ;;  %p1152_p12 = scmp.lt.s32.totalorder %s1146_s20, %s1146_s20 }
 0x4bd   :  { %818 = vxpose.xlu1.b32.cont [5/8] (short) (narrow) %v991_v58, 32 }
 0x4be   :  { %v993_v31 = vpop.f32.mrf.mxu1  ;;  %p1153_p13 = por %p1152_p12, %p1151_p11 }
 0x4bf   :  { %v994_v63 = vadd.f32 %v993_v31, %v992_v30 }
 0x4c0   :  { %v995_v32 = vpop.f32.mrf.mxu1  ;;  %p1154_p0 = pnand %p1153_p13, %p1147_p10 }
 0x4c1   :  { %819 = vxpose.xlu1.b32.cont [6/8] (short) (narrow) %v994_v63, 32 }
 0x4c2   :  { %v996_v4 = vpop.f32.mrf.mxu1 }
 0x4c3   :  { %v997_v33 = vadd.f32 %v996_v4, %v995_v32 }
 0x4c4   :  { %v998_v7 = vpop.f32.mrf.mxu1 }
 0x4c5   :  { %820 = vxpose.xlu1.b32.cont [7/8] (short) (narrow) %v997_v33, 32 }
 0x4c6   :  { %v999_v34 = vpop.f32.mrf.mxu1 }
 0x4c7   :  { %v1000_v9 = vadd.f32 %v999_v34, %v998_v7 }
 0x4c9   :  { %821 = vxpose.xlu1.b32.end [8/8] (short) (narrow) %v1000_v9, 32 }
 0x529   :  { %v830_v35 = vpop.trf.xlu1 }
 0x52a   :  { %846 = vst.msk [vmem:[#allocation6] sm:$0xff] %vm520_vm1, %v830_v35 }
 0x52d   :  { %v831_v11 = vpop.trf.xlu1 }
 0x52e   :  { %847 = vst.msk [vmem:[#allocation6 + $0x8] sm:$0xff] %vm520_vm1, %v831_v11 }
 0x531   :  { %v832_v28 = vpop.trf.xlu1 }
 0x532   :  { %848 = vst.msk [vmem:[#allocation6 + $0x10] sm:$0xff] %vm520_vm1, %v832_v28 }
 0x535   :  { %v833_v29 = vpop.trf.xlu1 }
 0x536   :  { %849 = vst.msk [vmem:[#allocation6 + $0x18] sm:$0xff] %vm520_vm1, %v833_v29 }
 0x537   :  { %1157 = shalt.err (!%p1154_p0)
}
 0x538   :  { %s1178_s21 = smov 128   ;;  %s1179_s22 = smov 8  }
 0x539   :  { %871 = dma.vmem_to_hbm [thread:$0]  %s866_s19, 512, %s1862_s7, [#allocation7], %s1178_s21, %s1178_s21, %s1179_s22  }
 0x53a   :  { %1168 = dma.done.wait [#allocation4], 128  }
 0x53b   :  { %1169 = vsyncadd [#allocation4], 4294967168 }
 0x53c   :  { %1170 = dma.done.wait [#allocation7], 512  }
 0x53d   :  { %1171 = vsyncadd [#allocation7], 4294966784 }
 0x53e   :  { %878 = vsyncpa [#allocation3], 1 }
 0x53f   :  { %879 = vsyncpa [#allocation4], 1 }
 0x540   :  { %880 = vsyncpa [#allocation7], 1 }

</bundles_post_ra>
